<compile_context>
chip_gen: v6e
topology: v6e:2x2x1
jax: 0.10.0
libtpu: 0.0.40
codegen_flags: <defaults>
</compile_context>

<pallas_src>
import math

import jax
import jax.numpy as jnp
from jax.experimental import pallas as pl
from jax.experimental.pallas import tpu as pltpu

# ---- small, module-consistent shapes --------------------------------------
B = 2                      # batch
CIN, COUT = 4, 8           # in_c != out_c -> residual branch is the 1x1 conv
H = W = 16                 # spatial
K = 7                      # Conv2d kernel_size
PAD = K // 2               # 'same' padding for odd kernel, stride 1
BN_EPS = 1e-5              # nn.BatchNorm2d default eps
_INV_SQRT2 = 1.0 / math.sqrt(2.0)

HW = H * W
NPIX = B * H * W           # 512 pixels -> lane axis
KKC = K * K * CIN          # 196 im2col contraction
KKC_PAD = 256              # pad contraction to an MXU-aligned 256
CENTER_OFF = (PAD * K + PAD) * CIN   # 96: centre-tap rows of the im2col slab


# ---------------------------------------------------------------------------
# Pallas kernel: fused conv7x7('same') + BN(eval) + GELU + 1x1-conv residual,
# all in the (COUT, NPIX) channels-on-sublanes / pixels-on-lanes orientation.
# ---------------------------------------------------------------------------
def _resconv_kernel(cols_ref, wflat_ref, wres_ref, shift_ref, o_ref):
    """cols_ref : (KKC_PAD, NPIX)  im2col slab (zero-padded contraction rows)
       wflat_ref: (COUT, KKC_PAD)  BN-scale-folded, flattened 7x7 conv weight
       wres_ref : (COUT, CIN)      1x1 residual conv weight
       shift_ref: (COUT, 1)        BN eval-mode additive shift
       o_ref    : (COUT, NPIX)     lane-dense output (512 lanes)
    """
    # --- one fat MXU matmul: conv + folded BN scale --------------------------
    h = jnp.dot(wflat_ref[...], cols_ref[...],
                preferred_element_type=jnp.float32) + shift_ref[...]

    # --- exact GELU (nn.GELU default, erf form) on dense (8, 512) vregs ------
    h = 0.5 * h * (1.0 + jax.lax.erf(h * _INV_SQRT2))

    # --- residual 1x1 conv: reuse the conv's centre-tap rows (== original x),
    #     CIN broadcast FMAs on the VPU instead of a tiny MXU matmul.
    # TODO(synk): the optional use_se=True (SE_Block) branch is not implemented;
    # this kernel covers the default use_se=False configuration.
    xc = cols_ref[CENTER_OFF:CENTER_OFF + CIN, :]            # (CIN, NPIX)
    wres = wres_ref[...]                                     # (COUT, CIN)
    out = h
    for c in range(CIN):
        out = out + wres[:, c:c + 1] * xc[c:c + 1, :]        # (8,1)*(1,512) FMA

    o_ref[...] = out                                         # transpose-free store


# ---------------------------------------------------------------------------
# JAX glue: wrapper (layout plumbing + pallas_call) and a pure-JAX reference.
# ---------------------------------------------------------------------------
def _full_spec(shape):
    zeros = (0,) * len(shape)
    return pl.BlockSpec(shape, lambda i, _z=zeros: _z)


def res_conv2d_simple(x_nchw, params):
    """ResConv2dSimple.forward (eval, use_se=False): (B,CIN,H,W) -> (B,COUT,H,W)."""
    assert x_nchw.shape == (B, CIN, H, W)

    # ---- wrapper-side parameter prep (layout plumbing, not compute hoisting) ----
    # Fold eval-mode BN scale into the conv weight; keep only the additive shift.
    inv_std = jax.lax.rsqrt(params["bn_var"] + BN_EPS)                 # (COUT,)
    scale = params["bn_gamma"] * inv_std
    shift = params["bn_beta"] - params["bn_mean"] * scale
    w_scaled = params["wconv"] * scale[None, None, None, :]            # (K,K,CIN,COUT)
    w_flat = w_scaled.reshape(KKC, COUT).T                             # (COUT, KKC)
    w_flat = jnp.pad(w_flat, ((0, 0), (0, KKC_PAD - KKC)))             # (COUT, 256)

    # ---- im2col slab: contraction on sublanes, pixels on lanes ----
    x_nhwc = jnp.transpose(x_nchw, (0, 2, 3, 1))                       # (B,H,W,CIN)
    x_pad = jnp.pad(x_nhwc, ((0, 0), (PAD, PAD), (PAD, PAD), (0, 0)))  # (B,Hp,Wp,CIN)
    windows = [x_pad[:, ky:ky + H, kx:kx + W, :]
               for ky in range(K) for kx in range(K)]                  # 49 x (B,H,W,CIN)
    cols = jnp.stack(windows, axis=3).reshape(NPIX, KKC).T             # (KKC, NPIX)
    cols = jnp.pad(cols, ((0, KKC_PAD - KKC), (0, 0)))                 # (256, NPIX)

    wres_t = params["wres"].T                                          # (COUT, CIN)
    shift2d = shift.reshape(COUT, 1)

    out_cm = pl.pallas_call(
        _resconv_kernel,
        out_shape=jax.ShapeDtypeStruct((COUT, NPIX), jnp.float32),
        grid=(1,),
        in_specs=[
            _full_spec((KKC_PAD, NPIX)),   # im2col slab (lane-dense)
            _full_spec((COUT, KKC_PAD)),   # folded+flattened conv weight
            _full_spec((COUT, CIN)),       # 1x1 residual weight
            _full_spec((COUT, 1)),         # BN shift
        ],
        out_specs=_full_spec((COUT, NPIX)),
        compiler_params=pltpu.CompilerParams(
            dimension_semantics=("arbitrary",)),
    )(cols, w_flat, wres_t, shift2d)

    # channel-major (COUT, B*H*W) -> PyTorch NCHW (wrapper-side layout plumbing)
    return jnp.transpose(out_cm.reshape(COUT, B, H, W), (1, 0, 2, 3))


def _reference(x_nchw, p):
    """Pure-JAX reference mirroring the PyTorch forward (eval mode)."""
    h = jax.lax.conv_general_dilated(
        x_nchw, p["wconv"], window_strides=(1, 1), padding="SAME",
        dimension_numbers=("NCHW", "HWIO", "NCHW"))
    inv_std = jax.lax.rsqrt(p["bn_var"] + BN_EPS)
    scale = p["bn_gamma"] * inv_std
    shift = p["bn_beta"] - p["bn_mean"] * scale
    h = h * scale[None, :, None, None] + shift[None, :, None, None]
    h = 0.5 * h * (1.0 + jax.lax.erf(h * _INV_SQRT2))
    res = jnp.einsum("bchw,cd->bdhw", x_nchw, p["wres"])
    return res + h


if __name__ == "__main__":
    key = jax.random.PRNGKey(0)
    ks = jax.random.split(key, 7)

    params = {
        # Conv2d(in_c, out_c, 7, padding='same', bias=False) weight in HWIO layout.
        "wconv": (1.0 / math.sqrt(CIN * K * K)) *
                 jax.random.normal(ks[0], (K, K, CIN, COUT), jnp.float32),
        # Residual Conv2d(in_c, out_c, 1, bias=False) weight as (CIN, COUT).
        "wres": (1.0 / math.sqrt(CIN)) *
                jax.random.normal(ks[1], (CIN, COUT), jnp.float32),
        # BatchNorm2d(out_c) eval-mode parameters / running stats.
        "bn_gamma": 1.0 + 0.1 * jax.random.normal(ks[2], (COUT,), jnp.float32),
        "bn_beta": 0.1 * jax.random.normal(ks[3], (COUT,), jnp.float32),
        "bn_mean": 0.1 * jax.random.normal(ks[4], (COUT,), jnp.float32),
        "bn_var": jax.random.uniform(ks[5], (COUT,), jnp.float32, 0.5, 1.5),
    }
    x = jax.random.normal(ks[6], (B, CIN, H, W), jnp.float32)   # PyTorch NCHW

    out = jax.block_until_ready(res_conv2d_simple(x, params))
    ref = jax.block_until_ready(_reference(x, params))

    assert out.shape == (B, COUT, H, W)
    assert jnp.max(jnp.abs(out - ref)) < 1e-3, "kernel mismatch vs reference"

    print("KERNEL_OK")
</pallas_src>

<mosaic_0001>
module attributes {stable_mosaic.version = 11 : i64} {
  func.func @_resconv_kernel(%arg0: i32, %arg1: memref<256x512xf32, #tpu.memory_space<vmem>>, %arg2: memref<8x256xf32, #tpu.memory_space<vmem>>, %arg3: memref<8x4xf32, #tpu.memory_space<vmem>>, %arg4: memref<8x1xf32, #tpu.memory_space<vmem>>, %arg5: memref<8x512xf32, #tpu.memory_space<vmem>>) attributes {dimension_semantics = [#tpu.dimension_semantics<arbitrary>], iteration_bounds = array<i64: 1>, scalar_prefetch = 0 : i64, scratch_operands = 0 : i64, tpu.core_type = #tpu.core_type<tc>, window_params = [{pipeline_mode = #tpu.pipeline_mode<synchronous>, transform_indices = @transform_0, window_bounds = array<i64: 256, 512>}, {pipeline_mode = #tpu.pipeline_mode<synchronous>, transform_indices = @transform_1, window_bounds = array<i64: 8, 256>}, {pipeline_mode = #tpu.pipeline_mode<synchronous>, transform_indices = @transform_2, window_bounds = array<i64: 8, 4>}, {pipeline_mode = #tpu.pipeline_mode<synchronous>, transform_indices = @transform_3, window_bounds = array<i64: 8, 1>}, {pipeline_mode = #tpu.pipeline_mode<synchronous>, transform_indices = @transform_4, window_bounds = array<i64: 8, 512>}]} {
    %c0 = arith.constant 0 : index
    %c0_0 = arith.constant 0 : index
    %0 = vector.load %arg2[%c0, %c0_0] : memref<8x256xf32, #tpu.memory_space<vmem>>, vector<8x256xf32>
    %c0_1 = arith.constant 0 : index
    %c0_2 = arith.constant 0 : index
    %1 = vector.load %arg1[%c0_1, %c0_2] : memref<256x512xf32, #tpu.memory_space<vmem>>, vector<256x512xf32>
    %cst = arith.constant dense<0.000000e+00> : vector<8x512xf32>
    %2 = tpu.matmul %0, %1, %cst {dimension_numbers = #tpu.dot_dimension_numbers<[1], [0], [0], [1], [0, 0, 1, 1], [], []>} : vector<8x256xf32>, vector<256x512xf32>, vector<8x512xf32> -> vector<8x512xf32>
    %c0_3 = arith.constant 0 : index
    %c0_4 = arith.constant 0 : index
    %3 = vector.load %arg4[%c0_3, %c0_4] : memref<8x1xf32, #tpu.memory_space<vmem>>, vector<8x1xf32>
    %4 = vector.broadcast %3 : vector<8x1xf32> to vector<8x512xf32>
    %5 = arith.addf %2, %4 : vector<8x512xf32>
    %cst_5 = arith.constant 5.000000e-01 : f32
    %6 = vector.broadcast %cst_5 : f32 to vector<8x512xf32>
    %7 = arith.mulf %6, %5 : vector<8x512xf32>
    %cst_6 = arith.constant 0.707106769 : f32
    %8 = vector.broadcast %cst_6 : f32 to vector<8x512xf32>
    %9 = arith.mulf %5, %8 : vector<8x512xf32>
    %10 = math.erf %9 : vector<8x512xf32>
    %cst_7 = arith.constant 1.000000e+00 : f32
    %11 = vector.broadcast %cst_7 : f32 to vector<8x512xf32>
    %12 = arith.addf %11, %10 : vector<8x512xf32>
    %13 = arith.mulf %7, %12 : vector<8x512xf32>
    %c96 = arith.constant 96 : index
    %c0_8 = arith.constant 0 : index
    %14 = vector.load %arg1[%c96, %c0_8] : memref<256x512xf32, #tpu.memory_space<vmem>>, vector<4x512xf32>
    %c0_9 = arith.constant 0 : index
    %c0_10 = arith.constant 0 : index
    %15 = vector.load %arg3[%c0_9, %c0_10] : memref<8x4xf32, #tpu.memory_space<vmem>>, vector<8x4xf32>
    %16 = vector.extract_strided_slice %15 {offsets = [0, 0], sizes = [8, 1], strides = [1, 1]} : vector<8x4xf32> to vector<8x1xf32>
    %17 = vector.extract_strided_slice %14 {offsets = [0, 0], sizes = [1, 512], strides = [1, 1]} : vector<4x512xf32> to vector<1x512xf32>
    %18 = vector.broadcast %16 : vector<8x1xf32> to vector<8x512xf32>
    %19 = vector.broadcast %17 : vector<1x512xf32> to vector<8x512xf32>
    %20 = arith.mulf %18, %19 : vector<8x512xf32>
    %21 = arith.addf %13, %20 : vector<8x512xf32>
    %22 = vector.extract_strided_slice %15 {offsets = [0, 1], sizes = [8, 1], strides = [1, 1]} : vector<8x4xf32> to vector<8x1xf32>
    %23 = vector.extract_strided_slice %14 {offsets = [1, 0], sizes = [1, 512], strides = [1, 1]} : vector<4x512xf32> to vector<1x512xf32>
    %24 = vector.broadcast %22 : vector<8x1xf32> to vector<8x512xf32>
    %25 = vector.broadcast %23 : vector<1x512xf32> to vector<8x512xf32>
    %26 = arith.mulf %24, %25 : vector<8x512xf32>
    %27 = arith.addf %21, %26 : vector<8x512xf32>
    %28 = vector.extract_strided_slice %15 {offsets = [0, 2], sizes = [8, 1], strides = [1, 1]} : vector<8x4xf32> to vector<8x1xf32>
    %29 = vector.extract_strided_slice %14 {offsets = [2, 0], sizes = [1, 512], strides = [1, 1]} : vector<4x512xf32> to vector<1x512xf32>
    %30 = vector.broadcast %28 : vector<8x1xf32> to vector<8x512xf32>
    %31 = vector.broadcast %29 : vector<1x512xf32> to vector<8x512xf32>
    %32 = arith.mulf %30, %31 : vector<8x512xf32>
    %33 = arith.addf %27, %32 : vector<8x512xf32>
    %34 = vector.extract_strided_slice %15 {offsets = [0, 3], sizes = [8, 1], strides = [1, 1]} : vector<8x4xf32> to vector<8x1xf32>
    %35 = vector.extract_strided_slice %14 {offsets = [3, 0], sizes = [1, 512], strides = [1, 1]} : vector<4x512xf32> to vector<1x512xf32>
    %36 = vector.broadcast %34 : vector<8x1xf32> to vector<8x512xf32>
    %37 = vector.broadcast %35 : vector<1x512xf32> to vector<8x512xf32>
    %38 = arith.mulf %36, %37 : vector<8x512xf32>
    %39 = arith.addf %33, %38 : vector<8x512xf32>
    %c0_11 = arith.constant 0 : index
    %c0_12 = arith.constant 0 : index
    %40 = vector.load %arg5[%c0_11, %c0_12] : memref<8x512xf32, #tpu.memory_space<vmem>>, vector<8x512xf32>
    tpu.vector_store %arg5[%c0_11, %c0_12], %39 {strides = array<i32>} : memref<8x512xf32, #tpu.memory_space<vmem>>, vector<8x512xf32>,
    return
  }
  func.func @transform_0(%arg0: i32) -> (i32, i32) {
    %c0_i32 = arith.constant 0 : i32
    %c0_i32_0 = arith.constant 0 : i32
    %c0_i32_1 = arith.constant 0 : i32
    return %c0_i32, %c0_i32_0 : i32, i32
  }
  func.func @transform_1(%arg0: i32) -> (i32, i32) {
    %c0_i32 = arith.constant 0 : i32
    %c0_i32_0 = arith.constant 0 : i32
    %c0_i32_1 = arith.constant 0 : i32
    return %c0_i32, %c0_i32_0 : i32, i32
  }
  func.func @transform_2(%arg0: i32) -> (i32, i32) {
    %c0_i32 = arith.constant 0 : i32
    %c0_i32_0 = arith.constant 0 : i32
    %c0_i32_1 = arith.constant 0 : i32
    return %c0_i32, %c0_i32_0 : i32, i32
  }
  func.func @transform_3(%arg0: i32) -> (i32, i32) {
    %c0_i32 = arith.constant 0 : i32
    %c0_i32_0 = arith.constant 0 : i32
    %c0_i32_1 = arith.constant 0 : i32
    return %c0_i32, %c0_i32_0 : i32, i32
  }
  func.func @transform_4(%arg0: i32) -> (i32, i32) {
    %c0_i32 = arith.constant 0 : i32
    %c0_i32_0 = arith.constant 0 : i32
    %c0_i32_1 = arith.constant 0 : i32
    return %c0_i32, %c0_i32_0 : i32, i32
  }
}

</mosaic_0001>

<bundles_post_ra>
// kernel: tpu_custom_call.1
= control target key start
LH: loop header
LB: loop body
LE: loop exit
PB: predicated region body
PF: predicated region fallthrough
CT: control target
= control target key end

     0   :  { %9 = vsyncpa [#allocation3], 0  ;;  %s594_s0 = inlined_call_operand.hbm [shape: f32[256,512], index: 0, kind: input, shape index: {}]   ;;  %s595_s1 = inlined_call_operand.vmem [shape: f32[8,256], index: 1, kind: input, shape index: {}]   ;;  %s596_s2 = inlined_call_operand.vmem [shape: f32[8,4], index: 2, kind: input, shape index: {}]   ;;  %s597_s3 = inlined_call_operand.vmem [shape: f32[8,1], index: 3, kind: input, shape index: {}]   ;;  %s598_s4 = inlined_call_operand.hbm [shape: f32[8,512], index: 4, kind: output, shape index: {}]  }
   0x1   :  { %10 = vsyncpa [#allocation4], 0  ;;  %s531_s15 = smov [#allocation2]  }
   0x2   :  { %s16_s16 = sshll.u32 %s531_s15, 4  ;;  %s17_s16 = int_to_ptr.vmem [resolvable:$true] %s16_s16 }
   0x3   :  { %s495_s17 = scalar_lea.vmem %s17_s16, 16384  ;;  %p500_p1 = scmp.lt.s32.totalorder %s17_s16, %s17_s16 }
   0x4   :  { %p496_p0 = scmp.ne.s32.totalorder %s17_s16, %s495_s17  ;;  %p501_p2 = scmp.lt.s32.totalorder %s495_s17, %s495_s17 }
   0x6   :  { %p502_p3 = por %p501_p2, %p500_p1 }
   0x8   :  { %p503_p4 = pnand %p502_p3, %p496_p0 }
   0xa   :  { %506 = shalt.err (!%p503_p4)
}
   0xb   :  { %s532_s18 = smov 512   ;;  %s533_s19 = smov 32  }
   0xc   :  { %22 = dma.hbm_to_vmem [thread:$0]  %s594_s0, 16384, %s17_s16, [#allocation3], %s532_s18, %s532_s18, %s533_s19  }
   0xd   :  { %527 = dma.done.wait [#allocation3], 16384  }
   0xe   :  { %528 = vsyncadd [#allocation3], 4294950912  ;;  %v534_v0 = vmov 0   ;;  %v535_v1 = vmov 1   ;;  %v95_v2 = vld [vmem:[#allocation2 + $0x1e8] sm:$0xff]  ;;  %v97_v3 = vld [vmem:[#allocation2 + $0x1f8] sm:$0xff] }
   0xf   :  { %475 = vset.pattern.permute.xlu0 %v534_v0  ;;  %476 = vset.pattern.permute.xlu1 %v535_v1  ;;  %v94_v4 = vld [vmem:[#allocation2 + $0x1e0] sm:$0xff]  ;;  %v96_v5 = vld [vmem:[#allocation2 + $0x1f0] sm:$0xff]  ;;  %v91_v6 = vld [vmem:[#allocation2 + $0x1c8] sm:$0xff] }
  0x10   :  { %168 = vmatprep.subr.mxu0 %v95_v2  ;;  %239 = vmatprep.subr.mxu1 %v97_v3  ;;  %v93_v7 = vld [vmem:[#allocation2 + $0x1d8] sm:$0xff]  ;;  %v90_v8 = vld [vmem:[#allocation2 + $0x1c0] sm:$0xff]  ;;  %v92_v9 = vld [vmem:[#allocation2 + $0x1d0] sm:$0xff] }
  0x11   :  { %169 = vmatpush1.msra.mxu0 %v94_v4  ;;  %240 = vmatpush1.msra.mxu1 %v96_v5  ;;  %v87_v10 = vld [vmem:[#allocation2 + $0x1a8] sm:$0xff]  ;;  %v89_v11 = vld [vmem:[#allocation2 + $0x1b8] sm:$0xff]  ;;  %v86_v12 = vld [vmem:[#allocation2 + $0x1a0] sm:$0xff] }
  0x12   :  { %170 = vmatprep.subr.mxu0 %v91_v6  ;;  %241 = vmatprep.subr.mxu1 %v93_v7  ;;  %v88_v13 = vld [vmem:[#allocation2 + $0x1b0] sm:$0xff]  ;;  %v83_v14 = vld [vmem:[#allocation2 + $0x188] sm:$0xff]  ;;  %v85_v15 = vld [vmem:[#allocation2 + $0x198] sm:$0xff] }
  0x13   :  { %171 = vmatpush1.msra.mxu0 %v90_v8  ;;  %242 = vmatpush1.msra.mxu1 %v92_v9  ;;  %v82_v16 = vld [vmem:[#allocation2 + $0x180] sm:$0xff]  ;;  %v84_v17 = vld [vmem:[#allocation2 + $0x190] sm:$0xff]  ;;  %v79_v18 = vld [vmem:[#allocation2 + $0x168] sm:$0xff] }
  0x14   :  { %172 = vmatprep.subr.mxu0 %v87_v10  ;;  %243 = vmatprep.subr.mxu1 %v89_v11  ;;  %v81_v19 = vld [vmem:[#allocation2 + $0x178] sm:$0xff]  ;;  %v78_v20 = vld [vmem:[#allocation2 + $0x160] sm:$0xff]  ;;  %v80_v21 = vld [vmem:[#allocation2 + $0x170] sm:$0xff] }
  0x15   :  { %173 = vmatpush1.msra.mxu0 %v86_v12  ;;  %244 = vmatpush1.msra.mxu1 %v88_v13  ;;  %v75_v22 = vld [vmem:[#allocation2 + $0x148] sm:$0xff]  ;;  %v77_v23 = vld [vmem:[#allocation2 + $0x158] sm:$0xff]  ;;  %v74_v24 = vld [vmem:[#allocation2 + $0x140] sm:$0xff] }
  0x16   :  { %174 = vmatprep.subr.mxu0 %v83_v14  ;;  %245 = vmatprep.subr.mxu1 %v85_v15  ;;  %v76_v25 = vld [vmem:[#allocation2 + $0x150] sm:$0xff]  ;;  %v71_v26 = vld [vmem:[#allocation2 + $0x128] sm:$0xff]  ;;  %v73_v27 = vld [vmem:[#allocation2 + $0x138] sm:$0xff] }
  0x17   :  { %175 = vmatpush1.msra.mxu0 %v82_v16  ;;  %246 = vmatpush1.msra.mxu1 %v84_v17  ;;  %v70_v28 = vld [vmem:[#allocation2 + $0x120] sm:$0xff]  ;;  %v72_v29 = vld [vmem:[#allocation2 + $0x130] sm:$0xff]  ;;  %v67_v30 = vld [vmem:[#allocation2 + $0x108] sm:$0xff] }
  0x18   :  { %176 = vmatprep.subr.mxu0 %v79_v18  ;;  %247 = vmatprep.subr.mxu1 %v81_v19  ;;  %v69_v31 = vld [vmem:[#allocation2 + $0x118] sm:$0xff]  ;;  %v66_v32 = vld [vmem:[#allocation2 + $0x100] sm:$0xff]  ;;  %v68_v33 = vld [vmem:[#allocation2 + $0x110] sm:$0xff] }
  0x19   :  { %177 = vmatpush1.msra.mxu0 %v78_v20  ;;  %248 = vmatpush1.msra.mxu1 %v80_v21  ;;  %v63_v34 = vld [vmem:[#allocation2 + $0xe8] sm:$0xff]  ;;  %v65_v35 = vld [vmem:[#allocation2 + $0xf8] sm:$0xff]  ;;  %v62_v36 = vld [vmem:[#allocation2 + $0xe0] sm:$0xff] }
  0x1a   :  { %178 = vmatprep.subr.mxu0 %v75_v22  ;;  %249 = vmatprep.subr.mxu1 %v77_v23  ;;  %v64_v37 = vld [vmem:[#allocation2 + $0xf0] sm:$0xff]  ;;  %v59_v38 = vld [vmem:[#allocation2 + $0xc8] sm:$0xff]  ;;  %v61_v39 = vld [vmem:[#allocation2 + $0xd8] sm:$0xff] }
  0x1b   :  { %179 = vmatpush1.msra.mxu0 %v74_v24  ;;  %250 = vmatpush1.msra.mxu1 %v76_v25  ;;  %v58_v40 = vld [vmem:[#allocation2 + $0xc0] sm:$0xff]  ;;  %v60_v41 = vld [vmem:[#allocation2 + $0xd0] sm:$0xff]  ;;  %v55_v42 = vld [vmem:[#allocation2 + $0xa8] sm:$0xff] }
  0x1c   :  { %180 = vmatprep.subr.mxu0 %v71_v26  ;;  %251 = vmatprep.subr.mxu1 %v73_v27  ;;  %v57_v43 = vld [vmem:[#allocation2 + $0xb8] sm:$0xff]  ;;  %v54_v44 = vld [vmem:[#allocation2 + $0xa0] sm:$0xff]  ;;  %v56_v45 = vld [vmem:[#allocation2 + $0xb0] sm:$0xff] }
  0x1d   :  { %181 = vmatpush1.msra.mxu0 %v70_v28  ;;  %252 = vmatpush1.msra.mxu1 %v72_v29  ;;  %v51_v46 = vld [vmem:[#allocation2 + $0x88] sm:$0xff]  ;;  %v53_v47 = vld [vmem:[#allocation2 + $0x98] sm:$0xff]  ;;  %v50_v48 = vld [vmem:[#allocation2 + $0x80] sm:$0xff] }
  0x1e   :  { %182 = vmatprep.subr.mxu0 %v67_v30  ;;  %253 = vmatprep.subr.mxu1 %v69_v31  ;;  %v52_v49 = vld [vmem:[#allocation2 + $0x90] sm:$0xff]  ;;  %v47_v50 = vld [vmem:[#allocation2 + $0x68] sm:$0xff]  ;;  %v49_v51 = vld [vmem:[#allocation2 + $0x78] sm:$0xff] }
  0x1f   :  { %183 = vmatpush1.msra.mxu0 %v66_v32  ;;  %254 = vmatpush1.msra.mxu1 %v68_v33  ;;  %v46_v52 = vld [vmem:[#allocation2 + $0x60] sm:$0xff]  ;;  %v48_v53 = vld [vmem:[#allocation2 + $0x70] sm:$0xff]  ;;  %v43_v54 = vld [vmem:[#allocation2 + $0x48] sm:$0xff] }
  0x20   :  { %184 = vmatprep.subr.mxu0 %v63_v34  ;;  %255 = vmatprep.subr.mxu1 %v65_v35  ;;  %v45_v55 = vld [vmem:[#allocation2 + $0x58] sm:$0xff]  ;;  %v42_v56 = vld [vmem:[#allocation2 + $0x40] sm:$0xff]  ;;  %v44_v57 = vld [vmem:[#allocation2 + $0x50] sm:$0xff] }
  0x21   :  { %185 = vmatpush1.msra.mxu0 %v62_v36  ;;  %256 = vmatpush1.msra.mxu1 %v64_v37  ;;  %v39_v58 = vld [vmem:[#allocation2 + $0x28] sm:$0xff]  ;;  %v41_v59 = vld [vmem:[#allocation2 + $0x38] sm:$0xff]  ;;  %v38_v60 = vld [vmem:[#allocation2 + $0x20] sm:$0xff] }
  0x22   :  { %186 = vmatprep.subr.mxu0 %v59_v38  ;;  %257 = vmatprep.subr.mxu1 %v61_v39  ;;  %v40_v61 = vld [vmem:[#allocation2 + $0x30] sm:$0xff]  ;;  %v35_v62 = vld [vmem:[#allocation2 + $0x8] sm:$0xff]  ;;  %v37_v63 = vld [vmem:[#allocation2 + $0x18] sm:$0xff] }
  0x23   :  { %187 = vmatpush1.msra.mxu0 %v58_v40  ;;  %258 = vmatpush1.msra.mxu1 %v60_v41  ;;  %v34_v0 = vld [vmem:[#allocation2] sm:$0xff]  ;;  %v36_v1 = vld [vmem:[#allocation2 + $0x10] sm:$0xff]  ;;  %v159_v2 = vld [vmem:[#allocation2 + $0x3e8] sm:$0xff] }
  0x24   :  { %188 = vmatprep.subr.mxu0 %v55_v42  ;;  %259 = vmatprep.subr.mxu1 %v57_v43  ;;  %v161_v3 = vld [vmem:[#allocation2 + $0x3f8] sm:$0xff]  ;;  %v158_v4 = vld [vmem:[#allocation2 + $0x3e0] sm:$0xff]  ;;  %v160_v5 = vld [vmem:[#allocation2 + $0x3f0] sm:$0xff] }
  0x25   :  { %189 = vmatpush1.msra.mxu0 %v54_v44  ;;  %260 = vmatpush1.msra.mxu1 %v56_v45  ;;  %v155_v6 = vld [vmem:[#allocation2 + $0x3c8] sm:$0xff]  ;;  %v157_v7 = vld [vmem:[#allocation2 + $0x3d8] sm:$0xff]  ;;  %v154_v8 = vld [vmem:[#allocation2 + $0x3c0] sm:$0xff] }
  0x26   :  { %190 = vmatprep.subr.mxu0 %v51_v46  ;;  %261 = vmatprep.subr.mxu1 %v53_v47  ;;  %v156_v9 = vld [vmem:[#allocation2 + $0x3d0] sm:$0xff]  ;;  %v151_v10 = vld [vmem:[#allocation2 + $0x3a8] sm:$0xff]  ;;  %v153_v11 = vld [vmem:[#allocation2 + $0x3b8] sm:$0xff] }
  0x27   :  { %191 = vmatpush1.msra.mxu0 %v50_v48  ;;  %262 = vmatpush1.msra.mxu1 %v52_v49  ;;  %v150_v12 = vld [vmem:[#allocation2 + $0x3a0] sm:$0xff]  ;;  %v152_v13 = vld [vmem:[#allocation2 + $0x3b0] sm:$0xff]  ;;  %v147_v14 = vld [vmem:[#allocation2 + $0x388] sm:$0xff] }
  0x28   :  { %192 = vmatprep.subr.mxu0 %v47_v50  ;;  %263 = vmatprep.subr.mxu1 %v49_v51  ;;  %v149_v15 = vld [vmem:[#allocation2 + $0x398] sm:$0xff]  ;;  %v146_v16 = vld [vmem:[#allocation2 + $0x380] sm:$0xff]  ;;  %v148_v17 = vld [vmem:[#allocation2 + $0x390] sm:$0xff] }
  0x29   :  { %193 = vmatpush1.msra.mxu0 %v46_v52  ;;  %264 = vmatpush1.msra.mxu1 %v48_v53  ;;  %v143_v18 = vld [vmem:[#allocation2 + $0x368] sm:$0xff]  ;;  %v145_v19 = vld [vmem:[#allocation2 + $0x378] sm:$0xff]  ;;  %v142_v20 = vld [vmem:[#allocation2 + $0x360] sm:$0xff] }
  0x2a   :  { %194 = vmatprep.subr.mxu0 %v43_v54  ;;  %265 = vmatprep.subr.mxu1 %v45_v55  ;;  %v144_v21 = vld [vmem:[#allocation2 + $0x370] sm:$0xff]  ;;  %v139_v22 = vld [vmem:[#allocation2 + $0x348] sm:$0xff]  ;;  %v141_v23 = vld [vmem:[#allocation2 + $0x358] sm:$0xff] }
  0x2b   :  { %195 = vmatpush1.msra.mxu0 %v42_v56  ;;  %266 = vmatpush1.msra.mxu1 %v44_v57  ;;  %v138_v24 = vld [vmem:[#allocation2 + $0x340] sm:$0xff]  ;;  %v140_v25 = vld [vmem:[#allocation2 + $0x350] sm:$0xff]  ;;  %v135_v26 = vld [vmem:[#allocation2 + $0x328] sm:$0xff] }
  0x2c   :  { %196 = vmatprep.subr.mxu0 %v39_v58  ;;  %267 = vmatprep.subr.mxu1 %v41_v59  ;;  %v137_v27 = vld [vmem:[#allocation2 + $0x338] sm:$0xff]  ;;  %v134_v28 = vld [vmem:[#allocation2 + $0x320] sm:$0xff]  ;;  %v136_v29 = vld [vmem:[#allocation2 + $0x330] sm:$0xff] }
  0x2d   :  { %197 = vmatpush1.msra.mxu0 %v38_v60  ;;  %268 = vmatpush1.msra.mxu1 %v40_v61  ;;  %v131_v30 = vld [vmem:[#allocation2 + $0x308] sm:$0xff]  ;;  %v133_v31 = vld [vmem:[#allocation2 + $0x318] sm:$0xff]  ;;  %v130_v32 = vld [vmem:[#allocation2 + $0x300] sm:$0xff] }
  0x2e   :  { %198 = vmatprep.subr.mxu0 %v35_v62  ;;  %269 = vmatprep.subr.mxu1 %v37_v63  ;;  %v132_v33 = vld [vmem:[#allocation2 + $0x310] sm:$0xff]  ;;  %v127_v34 = vld [vmem:[#allocation2 + $0x2e8] sm:$0xff]  ;;  %v129_v35 = vld [vmem:[#allocation2 + $0x2f8] sm:$0xff] }
  0x2f   :  { %199 = vmatpush1.msra.mxu0 %v34_v0  ;;  %270 = vmatpush1.msra.mxu1 %v36_v1  ;;  %v126_v36 = vld [vmem:[#allocation2 + $0x2e0] sm:$0xff]  ;;  %v128_v37 = vld [vmem:[#allocation2 + $0x2f0] sm:$0xff]  ;;  %v123_v38 = vld [vmem:[#allocation2 + $0x2c8] sm:$0xff] }
  0x30   :  { %200 = vmatprep.subr.mxu0 %v159_v2  ;;  %271 = vmatprep.subr.mxu1 %v161_v3  ;;  %v125_v39 = vld [vmem:[#allocation2 + $0x2d8] sm:$0xff]  ;;  %v122_v40 = vld [vmem:[#allocation2 + $0x2c0] sm:$0xff]  ;;  %v124_v41 = vld [vmem:[#allocation2 + $0x2d0] sm:$0xff] }
  0x31   :  { %201 = vmatpush2.msra.mxu0 %v158_v4  ;;  %272 = vmatpush2.msra.mxu1 %v160_v5  ;;  %v119_v42 = vld [vmem:[#allocation2 + $0x2a8] sm:$0xff]  ;;  %v121_v43 = vld [vmem:[#allocation2 + $0x2b8] sm:$0xff]  ;;  %v118_v44 = vld [vmem:[#allocation2 + $0x2a0] sm:$0xff] }
  0x32   :  { %202 = vmatprep.subr.mxu0 %v155_v6  ;;  %273 = vmatprep.subr.mxu1 %v157_v7  ;;  %v120_v45 = vld [vmem:[#allocation2 + $0x2b0] sm:$0xff]  ;;  %v115_v46 = vld [vmem:[#allocation2 + $0x288] sm:$0xff]  ;;  %v117_v47 = vld [vmem:[#allocation2 + $0x298] sm:$0xff]  ;;  %v536_v6 = vmov 2   ;;  %v537_v7 = vmov 3  }
  0x33   :  { %203 = vmatpush2.msra.mxu0 %v154_v8  ;;  %274 = vmatpush2.msra.mxu1 %v156_v9  ;;  %v114_v48 = vld [vmem:[#allocation2 + $0x280] sm:$0xff]  ;;  %v116_v49 = vld [vmem:[#allocation2 + $0x290] sm:$0xff]  ;;  %v111_v50 = vld [vmem:[#allocation2 + $0x268] sm:$0xff] }
  0x34   :  { %204 = vmatprep.subr.mxu0 %v151_v10  ;;  %275 = vmatprep.subr.mxu1 %v153_v11  ;;  %v113_v51 = vld [vmem:[#allocation2 + $0x278] sm:$0xff]  ;;  %v110_v52 = vld [vmem:[#allocation2 + $0x260] sm:$0xff]  ;;  %v112_v53 = vld [vmem:[#allocation2 + $0x270] sm:$0xff] }
  0x35   :  { %205 = vmatpush2.msra.mxu0 %v150_v12  ;;  %276 = vmatpush2.msra.mxu1 %v152_v13  ;;  %v107_v54 = vld [vmem:[#allocation2 + $0x248] sm:$0xff]  ;;  %v109_v55 = vld [vmem:[#allocation2 + $0x258] sm:$0xff]  ;;  %v106_v56 = vld [vmem:[#allocation2 + $0x240] sm:$0xff] }
  0x36   :  { %206 = vmatprep.subr.mxu0 %v147_v14  ;;  %277 = vmatprep.subr.mxu1 %v149_v15  ;;  %v108_v57 = vld [vmem:[#allocation2 + $0x250] sm:$0xff]  ;;  %v103_v58 = vld [vmem:[#allocation2 + $0x228] sm:$0xff]  ;;  %v105_v59 = vld [vmem:[#allocation2 + $0x238] sm:$0xff] }
  0x37   :  { %207 = vmatpush2.msra.mxu0 %v146_v16  ;;  %278 = vmatpush2.msra.mxu1 %v148_v17  ;;  %v102_v60 = vld [vmem:[#allocation2 + $0x220] sm:$0xff]  ;;  %v104_v61 = vld [vmem:[#allocation2 + $0x230] sm:$0xff]  ;;  %v99_v62 = vld [vmem:[#allocation2 + $0x208] sm:$0xff]  ;;  %v340_v17 = vlaneseq }
  0x38   :  { %208 = vmatprep.subr.mxu0 %v143_v18  ;;  %279 = vmatprep.subr.mxu1 %v145_v19  ;;  %v101_v63 = vld [vmem:[#allocation2 + $0x218] sm:$0xff]  ;;  %v98_v0 = vld [vmem:[#allocation2 + $0x200] sm:$0xff]  ;;  %v33_v1 = vld [vmem:[%s595_s1 + $0x8] sm:$0xff] }
  0x39   :  { %209 = vmatpush2.msra.mxu0 %v142_v20  ;;  %280 = vmatpush2.msra.mxu1 %v144_v21  ;;  %v100_v2 = vld [vmem:[#allocation2 + $0x210] sm:$0xff]  ;;  %v32_v3 = vld [vmem:[%s595_s1] sm:$0xff]  ;;  %v341_v21 = vshrl.u32 %v340_v17, 7  ;;  %s538_s1 = smov [#allocation5]  }
  0x3a   :  { %210 = vmatprep.subr.mxu0 %v139_v22  ;;  %281 = vmatprep.subr.mxu1 %v141_v23  ;;  %v162_v4 = vld [vmem:[%s597_s3] sm:$0xff] }
  0x3b   :  { %211 = vmatpush2.msra.mxu0 %v138_v24  ;;  %282 = vmatpush2.msra.mxu1 %v140_v25  ;;  %v334_v5 = vld [vmem:[%s596_s2] sm:$0xff]  ;;  %v342_v23 = vsub.s32 0, %v341_v21  ;;  %v579_v25 = vld [vmem:[#allocation2 + $0x188] sm:$0xf]  ;;  %s458_s2 = sshll.u32 %s538_s1, 4  ;;  %s459_s2 = int_to_ptr.vmem [resolvable:$true] %s458_s2 }
  0x3c   :  { %212 = vmatprep.subr.mxu0 %v135_v26  ;;  %283 = vmatprep.subr.mxu1 %v137_v27  ;;  %v330_v24 = vld [vmem:[#allocation2 + $0x180] sm:$0xf]  ;;  %v370_v26 = vsub.s32 1, %v341_v21  ;;  %v332_v27 = vld [vmem:[#allocation2 + $0x190] sm:$0xf]  ;;  %s507_s3 = scalar_lea.vmem %s459_s2, 512  ;;  %p512_p6 = scmp.lt.s32.totalorder %s459_s2, %s459_s2 }
  0x3d   :  { %213 = vmatpush2.msra.mxu0 %v134_v28  ;;  %284 = vmatpush2.msra.mxu1 %v136_v29  ;;  %v581_v28 = vld [vmem:[#allocation2 + $0x198] sm:$0xf]  ;;  %v398_v29 = vsub.s32 2, %v341_v21  ;;  %p508_p5 = scmp.ne.s32.totalorder %s459_s2, %s507_s3  ;;  %p513_p7 = scmp.lt.s32.totalorder %s507_s3, %s507_s3 }
  0x3e   :  { %214 = vmatprep.subr.mxu0 %v131_v30  ;;  %285 = vmatprep.subr.mxu1 %v133_v31  ;;  %v426_v31 = vsub.s32 3, %v341_v21 }
  0x3f   :  { %215 = vmatpush2.msra.mxu0 %v130_v32  ;;  %286 = vmatpush2.msra.mxu1 %v132_v33  ;;  %v343_v32 = vrot.slane %v330_v24, %v342_v23  ;;  %v347_v33 = vrot.slane %v579_v25, %v342_v23  ;;  %p514_p8 = por %p513_p7, %p512_p6 }
  0x40   :  { %216 = vmatprep.subr.mxu0 %v127_v34  ;;  %287 = vmatprep.subr.mxu1 %v129_v35  ;;  %v351_v34 = vrot.slane %v332_v27, %v342_v23  ;;  %v355_v35 = vrot.slane %v581_v28, %v342_v23 }
  0x41   :  { %217 = vmatpush2.msra.mxu0 %v126_v36  ;;  %288 = vmatpush2.msra.mxu1 %v128_v37  ;;  %v371_v36 = vrot.slane %v330_v24, %v370_v26  ;;  %v375_v37 = vrot.slane %v579_v25, %v370_v26  ;;  %p515_p9 = pnand %p514_p8, %p508_p5 }
  0x42   :  { %218 = vmatprep.subr.mxu0 %v123_v38  ;;  %289 = vmatprep.subr.mxu1 %v125_v39  ;;  %v379_v38 = vrot.slane %v332_v27, %v370_v26  ;;  %v383_v39 = vrot.slane %v581_v28, %v370_v26 }
  0x43   :  { %219 = vmatpush2.msra.mxu0 %v122_v40  ;;  %290 = vmatpush2.msra.mxu1 %v124_v41  ;;  %v399_v40 = vrot.slane %v330_v24, %v398_v29 }
  0x44   :  { %220 = vmatprep.subr.mxu0 %v119_v42  ;;  %291 = vmatprep.subr.mxu1 %v121_v43  ;;  %v403_v43 = vrot.slane %v579_v25, %v398_v29 }
  0x45   :  { %221 = vmatpush2.msra.mxu0 %v118_v44  ;;  %292 = vmatpush2.msra.mxu1 %v120_v45  ;;  %v407_v44 = vrot.slane %v332_v27, %v398_v29  ;;  %v411_v45 = vrot.slane %v581_v28, %v398_v29 }
  0x46   :  { %222 = vmatprep.subr.mxu0 %v115_v46  ;;  %293 = vmatprep.subr.mxu1 %v117_v47  ;;  %v427_v46 = vrot.slane %v330_v24, %v426_v31 }
  0x47   :  { %223 = vmatpush2.msra.mxu0 %v114_v48  ;;  %294 = vmatpush2.msra.mxu1 %v116_v49 }
  0x48   :  { %224 = vmatprep.subr.mxu0 %v111_v50  ;;  %295 = vmatprep.subr.mxu1 %v113_v51  ;;  %v431_v50 = vrot.slane %v579_v25, %v426_v31  ;;  %v435_v51 = vrot.slane %v332_v27, %v426_v31 }
  0x49   :  { %225 = vmatpush2.msra.mxu0 %v110_v52  ;;  %296 = vmatpush2.msra.mxu1 %v112_v53 }
  0x4a   :  { %226 = vmatprep.subr.mxu0 %v107_v54  ;;  %297 = vmatprep.subr.mxu1 %v109_v55 }
  0x4b   :  { %227 = vmatpush2.msra.mxu0 %v106_v56  ;;  %298 = vmatpush2.msra.mxu1 %v108_v57  ;;  %v439_v56 = vrot.slane %v581_v28, %v426_v31 }
  0x4c   :  { %228 = vmatprep.subr.mxu0 %v103_v58  ;;  %299 = vmatprep.subr.mxu1 %v105_v59 }
  0x4d   :  { %229 = vmatpush2.msra.mxu0 %v102_v60  ;;  %300 = vmatpush2.msra.mxu1 %v104_v61 }
  0x4e   :  { %230 = vmatprep.subr.mxu0 %v99_v62  ;;  %301 = vmatprep.subr.mxu1 %v101_v63 }
  0x4f   :  { %231 = vmatpush2.msra.mxu0 %v98_v0  ;;  %232 = vmatprep.mubr.f32.mxu0 %v33_v1 }
  0x50   :  { %302 = vmatpush2.msra.mxu1 %v100_v2  ;;  %303 = vmatprep.mubr.f32.mxu1 %v33_v1 }
  0x51   :  { %233 = vmatmul.mubr.f32.vlgmr.msra.gmra.mxu0 %v32_v3  ;;  %304 = vmatmul.mubr.f32.vlgmr.msra.gmra.mxu1 %v32_v3 }
  0x52   :  { %165 = vperm.xlu0 %475, %v162_v4   ;;  %365 = vperm.xlu1 %476, %v334_v5  }
  0x56   :  { %337 = vperm.xlu0 %475, %v334_v5   ;;  %477 = vset.pattern.permute.xlu1 %v536_v6 }
  0x57   :  { %393 = vperm.xlu1 %477, %v334_v5  }
  0x5a   :  { %478 = vset.pattern.permute.xlu0 %v537_v7 }
  0x5b   :  { %421 = vperm.xlu0 %478, %v334_v5  }
  0xcd   :  { %v166_v8 = vpop.permute.xlu0 %165  ;;  %v366_v30 = vpop.permute.xlu1 %365 }
  0xce   :  { %v384_v54 = vmul.f32 %v371_v36, %v366_v30  ;;  %v385_v60 = vmul.f32 %v375_v37, %v366_v30  ;;  %v386_v61 = vmul.f32 %v379_v38, %v366_v30 }
  0xd1   :  { %v338_v42 = vpop.permute.xlu0 %337 }
  0xd2   :  { %v394_v55 = vpop.permute.xlu1 %393  ;;  %v356_v59 = vmul.f32 %v343_v32, %v338_v42  ;;  %v358_v0 = vmul.f32 %v351_v34, %v338_v42 }
  0xd3   :  { %v412_v7 = vmul.f32 %v399_v40, %v394_v55  ;;  %v415_v23 = vmul.f32 %v411_v45, %v394_v55 }
  0xd6   :  { %v422_v3 = vpop.permute.xlu0 %421 }
  0xd7   :  { %v442_v21 = vmul.f32 %v435_v51, %v422_v3  ;;  %v441_v26 = vmul.f32 %v431_v50, %v422_v3  ;;  %v443_v28 = vmul.f32 %v439_v56, %v422_v3 }
 0x111   :  { %v234_v9 = vpop.f32.mrf.mxu0  ;;  %v305_v10 = vpop.f32.mrf.mxu1 }
 0x112   :  { %v235_v11 = vadd.f32 %v234_v9, %v166_v8  ;;  %v306_v12 = vadd.f32 %v305_v10, %v166_v8 }
 0x113   :  { %v236_v13 = vpop.f32.mrf.mxu0  ;;  %v307_v14 = vpop.f32.mrf.mxu1 }
 0x114   :  { %v314_v15 = vmul.f32 0.70710677, %v235_v11  ;;  %v316_v16 = vmul.f32 0.70710677, %v306_v12  ;;  %v237_v18 = vadd.f32 %v236_v13, %v166_v8  ;;  %v308_v19 = vadd.f32 %v307_v14, %v166_v8 }
 0x115   :  { %v310_v48 = vmul.f32 0.5, %v235_v11  ;;  %v312_v52 = vmul.f32 0.5, %v306_v12  ;;  %v357_v8 = vmul.f32 %v347_v33, %v338_v42  ;;  %v414_v11 = vmul.f32 %v407_v44, %v394_v55 }
 0x116   :  { %479 = verf.f32 %v314_v15  ;;  %v315_v20 = vmul.f32 0.70710677, %v237_v18  ;;  %v317_v22 = vmul.f32 0.70710677, %v308_v19  ;;  %v311_v1 = vmul.f32 0.5, %v237_v18 }
 0x117   :  { %481 = verf.f32 %v316_v16  ;;  %v313_v5 = vmul.f32 0.5, %v308_v19  ;;  %v359_v12 = vmul.f32 %v355_v35, %v338_v42  ;;  %v440_v15 = vmul.f32 %v427_v46, %v422_v3 }
 0x118   :  { %483 = verf.f32 %v315_v20  ;;  %v413_v20 = vmul.f32 %v403_v43, %v394_v55  ;;  %v387_v18 = vmul.f32 %v383_v39, %v366_v30 }
 0x119   :  { %485 = verf.f32 %v317_v22 }
 0x123   :  { %v480_v41 = vpop.eup %479 }
 0x124   :  { %v482_v47 = vpop.eup %481  ;;  %v322_v49 = vadd.f32 1.0, %v480_v41 }
 0x125   :  { %v324_v53 = vadd.f32 1.0, %v482_v47  ;;  %v484_v57 = vpop.eup %483 }
 0x126   :  { %v326_v58 = vmul.f32 %v322_v49, %v310_v48  ;;  %v486_v62 = vpop.eup %485  ;;  %v323_v2 = vadd.f32 1.0, %v484_v57 }
 0x127   :  { %v328_v63 = vmul.f32 %v324_v53, %v312_v52  ;;  %v325_v6 = vadd.f32 1.0, %v486_v62 }
 0x128   :  { %v360_v4 = vadd.f32 %v356_v59, %v326_v58  ;;  %v327_v10 = vmul.f32 %v323_v2, %v311_v1 }
 0x129   :  { %v362_v9 = vadd.f32 %v358_v0, %v328_v63  ;;  %v329_v13 = vmul.f32 %v325_v6, %v313_v5 }
 0x12a   :  { %v388_v14 = vadd.f32 %v384_v54, %v360_v4  ;;  %v361_v16 = vadd.f32 %v357_v8, %v327_v10 }
 0x12b   :  { %v390_v17 = vadd.f32 %v386_v61, %v362_v9  ;;  %v363_v22 = vadd.f32 %v359_v12, %v329_v13 }
 0x12c   :  { %v416_v24 = vadd.f32 %v412_v7, %v388_v14  ;;  %v389_v25 = vadd.f32 %v385_v60, %v361_v16 }
 0x12d   :  { %v418_v19 = vadd.f32 %v414_v11, %v390_v17  ;;  %v391_v27 = vadd.f32 %v387_v18, %v363_v22 }
 0x12e   :  { %v444_v29 = vadd.f32 %v440_v15, %v416_v24  ;;  %v417_v31 = vadd.f32 %v413_v20, %v389_v25 }
 0x12f   :  { %v446_v32 = vadd.f32 %v442_v21, %v418_v19  ;;  %v419_v33 = vadd.f32 %v415_v23, %v391_v27 }
 0x130   :  { %448 = vst [vmem:[#allocation5] sm:$0xff] %v444_v29  ;;  %v445_v34 = vadd.f32 %v441_v26, %v417_v31 }
 0x131   :  { %450 = vst [vmem:[#allocation5 + $0x10] sm:$0xff] %v446_v32  ;;  %v447_v35 = vadd.f32 %v443_v28, %v419_v33 }
 0x132   :  { %449 = vst [vmem:[#allocation5 + $0x8] sm:$0xff] %v445_v34 }
 0x133   :  { %451 = vst [vmem:[#allocation5 + $0x18] sm:$0xff] %v447_v35 }
 0x134   :  { %518 = shalt.err (!%p515_p9)
}
 0x135   :  { %461 = dma.vmem_to_hbm [thread:$0]  %s459_s2, 512, %s598_s4, [#allocation4]  }
 0x136   :  { %529 = dma.done.wait [#allocation4], 512  }
 0x137   :  { %530 = vsyncadd [#allocation4], 4294966784 }
 0x138   :  { %465 = vsyncpa [#allocation3], 1 }
 0x139   :  { %466 = vsyncpa [#allocation4], 1 }

</bundles_post_ra>
